<compile_context>
chip_gen: v7x
topology: tpu7x:2x2x1
jax: 0.10.0
libtpu: 0.0.40
codegen_flags: <defaults>
</compile_context>

<pallas_src>
import jax
import jax.numpy as jnp
from jax.experimental import pallas as pl
from jax.experimental.pallas import tpu as pltpu


def _mlp_kernel(x_ref, w1_ref, w2_ref, w3_ref, w4_ref, b_ref, o_ref):
    # x_ref: (F, TB) bf16 — batch on the lane axis.
    x = x_ref[...]

    # Packed biases (f32), one column per layer, shaped (out, 1) to broadcast over batch.
    b1 = b_ref[0:64, 0:1]
    b2 = b_ref[0:48, 1:2]
    b3 = b_ref[0:32, 2:3]
    b4 = b_ref[0:1, 3:4]

    # Layer 1: Linear(F,64) [+ folded BN] -> ReLU   (Dropout = identity in eval)
    h = jnp.dot(w1_ref[...], x, preferred_element_type=jnp.float32) + b1
    h = jnp.maximum(h, 0.0)

    # Layer 2: Linear(64,48) [+ folded BN] -> ReLU
    h = jnp.dot(w2_ref[...], h.astype(jnp.bfloat16),
                preferred_element_type=jnp.float32) + b2
    h = jnp.maximum(h, 0.0)

    # Layer 3: Linear(48,32) [+ folded BN] -> ReLU
    h = jnp.dot(w3_ref[...], h.astype(jnp.bfloat16),
                preferred_element_type=jnp.float32) + b3
    h = jnp.maximum(h, 0.0)

    # Layer 4: Linear(32,1) -> Sigmoid  (f32 epilogue, lane-dense (1, TB) store)
    y = jnp.dot(w4_ref[...], h.astype(jnp.bfloat16),
                preferred_element_type=jnp.float32) + b4
    o_ref[...] = jax.nn.sigmoid(y).astype(o_ref.dtype)


def mlp_forward(x, kp, *, tb=4096):
    """x: (B, F) float32. kp: folded kernel params from fold_params(). Returns (B, 1) f32."""
    B, F = x.shape
    # (F, B): feature-major, batch on lanes; bf16 halves the DMA bytes the kernel reads.
    xt = x.T.astype(jnp.bfloat16)

    if B <= tb:
        TB, Bp = B, B              # single block: block dims equal full dims (always legal)
    else:
        TB = tb                    # multiple of 128; fits default scoped-VMEM on all chips
        Bp = ((B + TB - 1) // TB) * TB
        if Bp != B:
            xt = jnp.pad(xt, ((0, 0), (0, Bp - B)))
    grid = (Bp // TB,)

    w1, w2, w3, w4, bias = kp["w1"], kp["w2"], kp["w3"], kp["w4"], kp["bias"]

    flops = 2 * B * (F * 64 + 64 * 48 + 48 * 32 + 32 * 1)
    bytes_accessed = (xt.size * 2
                      + sum(int(w.size) * 2 for w in (w1, w2, w3, w4))
                      + int(bias.size) * 4
                      + Bp * 4)

    out = pl.pallas_call(
        _mlp_kernel,
        out_shape=jax.ShapeDtypeStruct((1, Bp), jnp.float32),
        grid=grid,
        in_specs=[
            pl.BlockSpec((F, TB), lambda i: (0, i)),        # x tile: double-buffered over batch
            pl.BlockSpec(w1.shape, lambda i: (0, 0)),       # constant block index ->
            pl.BlockSpec(w2.shape, lambda i: (0, 0)),       #   weights fetched once,
            pl.BlockSpec(w3.shape, lambda i: (0, 0)),       #   stay VMEM-resident
            pl.BlockSpec(w4.shape, lambda i: (0, 0)),
            pl.BlockSpec(bias.shape, lambda i: (0, 0)),     # packed biases: one small DMA
        ],
        out_specs=pl.BlockSpec((1, TB), lambda i: (0, i)),  # lane-dense output slab
        compiler_params=pltpu.CompilerParams(
            dimension_semantics=("parallel",)),             # v7x: shard batch over 2 TCs
        cost_estimate=pl.CostEstimate(
            flops=int(flops), transcendentals=int(B),
            bytes_accessed=int(bytes_accessed)),
    )(xt, w1, w2, w3, w4, bias)

    return out[:, :B].T  # (B, 1)


def init_params(key, in_features):
    """Torch-style parameters: Linear (out,in)+bias, BatchNorm1d gamma/beta/running stats."""
    dims = [(in_features, 64), (64, 48), (48, 32), (32, 1)]
    keys = jax.random.split(key, 16)
    raw = {}
    k = 0
    for li, (fin, fout) in enumerate(dims, start=1):
        bound = 1.0 / (fin ** 0.5)
        raw[f"w{li}"] = jax.random.uniform(keys[k], (fout, fin), jnp.float32, -bound, bound); k += 1
        raw[f"b{li}"] = jax.random.uniform(keys[k], (fout,), jnp.float32, -bound, bound); k += 1
        if li < 4:  # BatchNorm1d after the first three linears
            raw[f"gamma{li}"] = 1.0 + 0.1 * jax.random.normal(keys[k], (fout,), jnp.float32); k += 1
            raw[f"beta{li}"] = 0.1 * jax.random.normal(keys[k], (fout,), jnp.float32); k += 1
            raw[f"mean{li}"] = 0.05 * jnp.arange(fout, dtype=jnp.float32) / fout
            raw[f"var{li}"] = jnp.ones((fout,), jnp.float32)
    return raw


def fold_params(raw, eps=1e-5):
    """Fold eval-mode BN into weights/biases; emit kernel layout (bf16 weights, packed f32 biases)."""
    ws, bs = [], []
    for li in range(1, 5):
        w = raw[f"w{li}"]      # (out, in)
        b = raw[f"b{li}"]      # (out,)
        if li < 4:
            s = raw[f"gamma{li}"] / jnp.sqrt(raw[f"var{li}"] + eps)
            t = raw[f"beta{li}"] - raw[f"mean{li}"] * s
            w = w * s[:, None]
            b = b * s + t
        ws.append(w.astype(jnp.bfloat16))
        bs.append(b)
    bias_pack = jnp.zeros((128, 4), jnp.float32)
    for j, b in enumerate(bs):
        bias_pack = bias_pack.at[: b.shape[0], j].set(b)
    return {"w1": ws[0], "w2": ws[1], "w3": ws[2], "w4": ws[3], "bias": bias_pack}


def _reference(x, raw, eps=1e-5):
    """Pure-JAX f32 reference (eval mode: BN running stats, dropout = identity)."""
    h = x
    for li in range(1, 5):
        h = h @ raw[f"w{li}"].T + raw[f"b{li}"]
        if li < 4:
            s = raw[f"gamma{li}"] / jnp.sqrt(raw[f"var{li}"] + eps)
            t = raw[f"beta{li}"] - raw[f"mean{li}"] * s
            h = h * s + t
            h = jnp.maximum(h, 0.0)
    return jax.nn.sigmoid(h)


if __name__ == "__main__":
    # TODO(synk): train-mode BatchNorm (batch statistics) and Dropout sampling are not
    # implemented; this kernel matches the module in eval/inference mode.
    opt = "nn"  # {'nn': 31, 'ny': 37, 'yn': 32, 'yy': 38}
    in_features = {"nn": 31, "ny": 37, "yn": 32, "yy": 38}[opt]
    B = 8

    key = jax.random.PRNGKey(0)
    kx, kp = jax.random.split(key)
    x = jax.random.normal(kx, (B, in_features), dtype=jnp.float32)
    raw = init_params(kp, in_features)
    kernel_params = fold_params(raw)

    out = mlp_forward(x, kernel_params)
    out = jax.block_until_ready(out)

    assert out.shape == (B, 1)
    assert bool(jnp.all((out >= 0.0) & (out <= 1.0)))
    ref = _reference(x, raw)
    assert bool(jnp.max(jnp.abs(out - ref)) < 5e-2)  # bf16 matmul tolerance
    print("KERNEL_OK")
</pallas_src>

<mosaic_0001>
module attributes {stable_mosaic.version = 11 : i64} {
  func.func @_mlp_kernel(%arg0: i32, %arg1: memref<31x8xbf16, #tpu.memory_space<vmem>>, %arg2: memref<64x31xbf16, #tpu.memory_space<vmem>>, %arg3: memref<48x64xbf16, #tpu.memory_space<vmem>>, %arg4: memref<32x48xbf16, #tpu.memory_space<vmem>>, %arg5: memref<1x32xbf16, #tpu.memory_space<vmem>>, %arg6: memref<128x4xf32, #tpu.memory_space<vmem>>, %arg7: memref<1x8xf32, #tpu.memory_space<vmem>>) attributes {dimension_semantics = [#tpu.dimension_semantics<parallel>], iteration_bounds = array<i64: 1>, scalar_prefetch = 0 : i64, scratch_operands = 0 : i64, tpu.core_type = #tpu.core_type<tc>, window_params = [{transform_indices = @transform_0, window_bounds = array<i64: 31, 8>}, {pipeline_mode = #tpu.pipeline_mode<synchronous>, transform_indices = @transform_1, window_bounds = array<i64: 64, 31>}, {pipeline_mode = #tpu.pipeline_mode<synchronous>, transform_indices = @transform_2, window_bounds = array<i64: 48, 64>}, {pipeline_mode = #tpu.pipeline_mode<synchronous>, transform_indices = @transform_3, window_bounds = array<i64: 32, 48>}, {pipeline_mode = #tpu.pipeline_mode<synchronous>, transform_indices = @transform_4, window_bounds = array<i64: 1, 32>}, {pipeline_mode = #tpu.pipeline_mode<synchronous>, transform_indices = @transform_5, window_bounds = array<i64: 128, 4>}, {transform_indices = @transform_6, window_bounds = array<i64: 1, 8>}]} {
    %c0 = arith.constant 0 : index
    %c0_0 = arith.constant 0 : index
    %0 = vector.load %arg1[%c0, %c0_0] : memref<31x8xbf16, #tpu.memory_space<vmem>>, vector<31x8xbf16>
    %c0_1 = arith.constant 0 : index
    %c0_2 = arith.constant 0 : index
    %1 = vector.load %arg6[%c0_1, %c0_2] : memref<128x4xf32, #tpu.memory_space<vmem>>, vector<64x1xf32>
    %c0_3 = arith.constant 0 : index
    %c1 = arith.constant 1 : index
    %2 = vector.load %arg6[%c0_3, %c1] : memref<128x4xf32, #tpu.memory_space<vmem>>, vector<48x1xf32>
    %c0_4 = arith.constant 0 : index
    %c2 = arith.constant 2 : index
    %3 = vector.load %arg6[%c0_4, %c2] : memref<128x4xf32, #tpu.memory_space<vmem>>, vector<32x1xf32>
    %c0_5 = arith.constant 0 : index
    %c3 = arith.constant 3 : index
    %4 = vector.load %arg6[%c0_5, %c3] : memref<128x4xf32, #tpu.memory_space<vmem>>, vector<1x1xf32>
    %c0_6 = arith.constant 0 : index
    %c0_7 = arith.constant 0 : index
    %5 = vector.load %arg2[%c0_6, %c0_7] : memref<64x31xbf16, #tpu.memory_space<vmem>>, vector<64x31xbf16>
    %cst = arith.constant dense<0.000000e+00> : vector<64x8xf32>
    %6 = tpu.matmul %5, %0, %cst {dimension_numbers = #tpu.dot_dimension_numbers<[1], [0], [0], [1], [0, 0, 1, 1], [], []>} : vector<64x31xbf16>, vector<31x8xbf16>, vector<64x8xf32> -> vector<64x8xf32>
    %7 = vector.broadcast %1 : vector<64x1xf32> to vector<64x8xf32>
    %8 = arith.addf %6, %7 : vector<64x8xf32>
    %cst_8 = arith.constant 0.000000e+00 : f32
    %9 = vector.broadcast %cst_8 : f32 to vector<64x8xf32>
    %10 = arith.maximumf %8, %9 : vector<64x8xf32>
    %c0_9 = arith.constant 0 : index
    %c0_10 = arith.constant 0 : index
    %11 = vector.load %arg3[%c0_9, %c0_10] : memref<48x64xbf16, #tpu.memory_space<vmem>>, vector<48x64xbf16>
    %12 = arith.truncf %10 : vector<64x8xf32> to vector<64x8xbf16>
    %cst_11 = arith.constant dense<0.000000e+00> : vector<48x8xf32>
    %13 = tpu.matmul %11, %12, %cst_11 {dimension_numbers = #tpu.dot_dimension_numbers<[1], [0], [0], [1], [0, 0, 1, 1], [], []>} : vector<48x64xbf16>, vector<64x8xbf16>, vector<48x8xf32> -> vector<48x8xf32>
    %14 = vector.broadcast %2 : vector<48x1xf32> to vector<48x8xf32>
    %15 = arith.addf %13, %14 : vector<48x8xf32>
    %cst_12 = arith.constant 0.000000e+00 : f32
    %16 = vector.broadcast %cst_12 : f32 to vector<48x8xf32>
    %17 = arith.maximumf %15, %16 : vector<48x8xf32>
    %c0_13 = arith.constant 0 : index
    %c0_14 = arith.constant 0 : index
    %18 = vector.load %arg4[%c0_13, %c0_14] : memref<32x48xbf16, #tpu.memory_space<vmem>>, vector<32x48xbf16>
    %19 = arith.truncf %17 : vector<48x8xf32> to vector<48x8xbf16>
    %cst_15 = arith.constant dense<0.000000e+00> : vector<32x8xf32>
    %20 = tpu.matmul %18, %19, %cst_15 {dimension_numbers = #tpu.dot_dimension_numbers<[1], [0], [0], [1], [0, 0, 1, 1], [], []>} : vector<32x48xbf16>, vector<48x8xbf16>, vector<32x8xf32> -> vector<32x8xf32>
    %21 = vector.broadcast %3 : vector<32x1xf32> to vector<32x8xf32>
    %22 = arith.addf %20, %21 : vector<32x8xf32>
    %cst_16 = arith.constant 0.000000e+00 : f32
    %23 = vector.broadcast %cst_16 : f32 to vector<32x8xf32>
    %24 = arith.maximumf %22, %23 : vector<32x8xf32>
    %c0_17 = arith.constant 0 : index
    %c0_18 = arith.constant 0 : index
    %25 = vector.load %arg5[%c0_17, %c0_18] : memref<1x32xbf16, #tpu.memory_space<vmem>>, vector<1x32xbf16>
    %26 = arith.truncf %24 : vector<32x8xf32> to vector<32x8xbf16>
    %cst_19 = arith.constant dense<0.000000e+00> : vector<1x8xf32>
    %27 = tpu.matmul %25, %26, %cst_19 {dimension_numbers = #tpu.dot_dimension_numbers<[1], [0], [0], [1], [0, 0, 1, 1], [], []>} : vector<1x32xbf16>, vector<32x8xbf16>, vector<1x8xf32> -> vector<1x8xf32>
    %28 = vector.broadcast %4 : vector<1x1xf32> to vector<1x8xf32>
    %29 = arith.addf %27, %28 : vector<1x8xf32>
    %30 = arith.negf %29 : vector<1x8xf32>
    %31 = math.exp %30 : vector<1x8xf32>
    %cst_20 = arith.constant 1.000000e+00 : f32
    %32 = vector.broadcast %cst_20 : f32 to vector<1x8xf32>
    %33 = arith.addf %32, %31 : vector<1x8xf32>
    %34 = arith.divf %32, %33 : vector<1x8xf32>
    %c0_21 = arith.constant 0 : index
    %c0_22 = arith.constant 0 : index
    %35 = vector.load %arg7[%c0_21, %c0_22] : memref<1x8xf32, #tpu.memory_space<vmem>>, vector<1x8xf32>
    tpu.vector_store %arg7[%c0_21, %c0_22], %34 {strides = array<i32>} : memref<1x8xf32, #tpu.memory_space<vmem>>, vector<1x8xf32>,
    return
  }
  func.func @transform_0(%arg0: i32) -> (i32, i32) {
    %c0_i32 = arith.constant 0 : i32
    %c0_i32_0 = arith.constant 0 : i32
    return %c0_i32, %arg0 : i32, i32
  }
  func.func @transform_1(%arg0: i32) -> (i32, i32) {
    %c0_i32 = arith.constant 0 : i32
    %c0_i32_0 = arith.constant 0 : i32
    %c0_i32_1 = arith.constant 0 : i32
    return %c0_i32, %c0_i32_0 : i32, i32
  }
  func.func @transform_2(%arg0: i32) -> (i32, i32) {
    %c0_i32 = arith.constant 0 : i32
    %c0_i32_0 = arith.constant 0 : i32
    %c0_i32_1 = arith.constant 0 : i32
    return %c0_i32, %c0_i32_0 : i32, i32
  }
  func.func @transform_3(%arg0: i32) -> (i32, i32) {
    %c0_i32 = arith.constant 0 : i32
    %c0_i32_0 = arith.constant 0 : i32
    %c0_i32_1 = arith.constant 0 : i32
    return %c0_i32, %c0_i32_0 : i32, i32
  }
  func.func @transform_4(%arg0: i32) -> (i32, i32) {
    %c0_i32 = arith.constant 0 : i32
    %c0_i32_0 = arith.constant 0 : i32
    %c0_i32_1 = arith.constant 0 : i32
    return %c0_i32, %c0_i32_0 : i32, i32
  }
  func.func @transform_5(%arg0: i32) -> (i32, i32) {
    %c0_i32 = arith.constant 0 : i32
    %c0_i32_0 = arith.constant 0 : i32
    %c0_i32_1 = arith.constant 0 : i32
    return %c0_i32, %c0_i32_0 : i32, i32
  }
  func.func @transform_6(%arg0: i32) -> (i32, i32) {
    %c0_i32 = arith.constant 0 : i32
    %c0_i32_0 = arith.constant 0 : i32
    return %c0_i32, %arg0 : i32, i32
  }
}

</mosaic_0001>

<bundles_post_ra>
// kernel: tpu_custom_call.1
= control target key start
LH: loop header
LB: loop body
LE: loop exit
PB: predicated region body
PF: predicated region fallthrough
CT: control target
= control target key end

     0   :  { %vm130_vm0 = vcmask 1046528   ;;  %vm131_vm1 = vcmask 1047552   ;;  %v646_v3 = vmov 65535   ;;  %vm117_vm2 = vcmask 252928   ;;  %s804_s0 = inlined_call_operand.vmem [shape: bf16[31,8], index: 0, kind: input, shape index: {}]   ;;  %s805_s1 = inlined_call_operand.vmem [shape: bf16[64,31], index: 1, kind: input, shape index: {}]   ;;  %s806_s2 = inlined_call_operand.vmem [shape: bf16[48,64], index: 2, kind: input, shape index: {}]   ;;  %s807_s3 = inlined_call_operand.vmem [shape: bf16[32,48], index: 3, kind: input, shape index: {}]   ;;  %s808_s4 = inlined_call_operand.vmem [shape: bf16[1,32], index: 4, kind: input, shape index: {}]   ;;  %s809_s5 = inlined_call_operand.vmem [shape: f32[128,4], index: 5, kind: input, shape index: {}]   ;;  %s810_s6 = inlined_call_operand.hbm [shape: f32[1,8], index: 6, kind: output, shape index: {}]  }
   0x1   :  { %v607_v0 = vld [vmem:[%s804_s0] sm:$0xff]   ;;  %v608_v1 = vld [vmem:[%s804_s0 + $0x8] sm:$0xff]   ;;  %v132_v4 = vsel %vm130_vm0, 4294967295, %v646_v3  ;;  %v647_v7 = vmov 0   ;;  %v707_v9 = vld [vmem:[%s809_s5 + $0x10] sm:$0xff] }
   0x2   :  { %542 = vmatprep.subr.bf16.mxu0 %v607_v0  ;;  %v609_v2 = vld [vmem:[%s805_s1] sm:$0xff]   ;;  %v133_v5 = vsel %vm131_vm1, %v132_v4, 0  ;;  %600 = vset.pattern.permute.xlu0 %v647_v7  ;;  %v610_v10 = vld [vmem:[%s805_s1 + $0x8] sm:$0xff]   ;;  %v611_v11 = vld [vmem:[%s805_s1 + $0x10] sm:$0xff]  }
   0x3   :  { %543 = vmatpush3.bf16.msra.mxu0 %v607_v0  ;;  %546 = vmatprep.mubr.msk.bf16.mxu0 %vm117_vm2, %v609_v2  ;;  %v135_v6 = vand.u32 %v608_v1, %v133_v5  ;;  %v702_v8 = vld [vmem:[%s809_s5] sm:$0xff]  ;;  %v720_v12 = vld [vmem:[%s809_s5 + $0x8] sm:$0xff]  ;;  %v725_v13 = vld [vmem:[%s809_s5 + $0x18] sm:$0xff] }
   0x4   :  { %601 = vset.pattern.permute.xlu1 %v647_v7  ;;  %48 = vperm.xlu0 %600, %v702_v8   ;;  %v33_v14 = vld [vmem:[%s809_s5 + $0x20] sm:$0xff] }
   0x5   :  { %544 = vmatprep.subr.bf16.mxu0 %v135_v6  ;;  %58 = vperm.xlu1 %601, %v707_v9  }
   0x7   :  { %545 = vmatpush3.bf16.msra.mxu0 %v135_v6 }
   0x8   :  { %53 = vperm.xlu0 %600, %v720_v12  }
   0x9   :  { %63 = vperm.xlu1 %601, %v725_v13  }
   0xa   :  { %547 = vmatmul.mubr.msk.bf16.vlgmr.msra.gmra.mrb[0].mxu0 %vm117_vm2, %v610_v10 }
   0xb   :  { %550 = vmatprep.mubr.msk.bf16.mxu0 %vm117_vm2, %v611_v11 }
   0xc   :  { %11 = vsyncpa [#allocation3], 0  ;;  %v34_v15 = vld [vmem:[%s809_s5 + $0x28] sm:$0xff]  ;;  %v612_v16 = vld [vmem:[%s805_s1 + $0x18] sm:$0xff]   ;;  %68 = vperm.xlu0 %600, %v33_v14   ;;  %v648_v19 = vmov 0.0   ;;  %vm649_vm3 = vmmov 0  }
   0xd   :  { %73 = vperm.xlu1 %601, %v34_v15   ;;  %v35_v17 = vld [vmem:[%s809_s5 + $0x30] sm:$0xff]  ;;  %v36_v18 = vld [vmem:[%s809_s5 + $0x38] sm:$0xff]  ;;  %554 = vmatprep.subr.bf16.mxu1 %v648_v19  ;;  %v650_v20 = vmov 1   ;;  %v613_v57 = vld [vmem:[%s806_s2] sm:$0xff]   ;;  %vm259_vm4 = vcmask 523264   ;;  %vm365_vm5 = vcmask 392192  }
   0xe   :  { %562 = vmatprep.mubr.msk.bf16.mxu1 %vm649_vm3, %v648_v19  ;;  %v614_v58 = vld [vmem:[%s806_s2 + $0x8] sm:$0xff]   ;;  %v615_v59 = vld [vmem:[%s806_s2 + $0x10] sm:$0xff]   ;;  %v616_v60 = vld [vmem:[%s807_s3] sm:$0xff]   ;;  %v651_v61 = vmov 2   ;;  %vm433_vm6 = vcmask 261120   ;;  %s653_s9 = smov [#allocation2]  }
   0xf   :  { %s491_s10 = sshll.u32 %s653_s9, 4  ;;  %vm483_vm7 = vcmask 57344   ;;  %s492_s10 = int_to_ptr.vmem [resolvable:$true] %s491_s10 }
  0x10   :  { %78 = vperm.xlu0 %600, %v35_v17   ;;  %s626_s11 = scalar_lea.vmem %s492_s10, 32  ;;  %p627_p1 = scmp.lt.s32.totalorder %s492_s10, %s492_s10 }
  0x11   :  { %83 = vperm.xlu1 %601, %v36_v18  }
  0x12   :  { %551 = vmatmul.mubr.msk.bf16.gmra.mrb[4].mxu0 %vm117_vm2, %v612_v16 }
  0x13   :  { %580 = vmatprep.mubr.msk.bf16.mxu0 %vm365_vm5, %v616_v60 }
  0x14   :  { %602 = vset.pattern.permute.xlu0 %v650_v20 }
  0x15   :  { %603 = vset.pattern.permute.xlu1 %v650_v20  ;;  %221 = vperm.xlu0 %602, %v702_v8  }
  0x16   :  { %225 = vperm.xlu1 %603, %v720_v12  }
  0x19   :  { %233 = vperm.xlu0 %602, %v725_v13  }
  0x1a   :  { %229 = vperm.xlu1 %603, %v707_v9  }
  0x1d   :  { %241 = vperm.xlu0 %602, %v34_v15  }
  0x1e   :  { %237 = vperm.xlu1 %603, %v33_v14  }
  0x21   :  { %605 = vset.pattern.permute.xlu0 %v651_v61 }
  0x22   :  { %604 = vset.pattern.permute.xlu1 %v651_v61  ;;  %344 = vperm.xlu0 %605, %v720_v12  }
  0x23   :  { %340 = vperm.xlu1 %604, %v702_v8  }
  0x27   :  { %348 = vperm.xlu1 %604, %v707_v9  }
  0x2b   :  { %352 = vperm.xlu1 %604, %v725_v13  }
  0x83   :  { %v49_v21 = vpop.permute.xlu0 %48 }
  0x84   :  { %v59_v22 = vpop.permute.xlu1 %58 }
  0x87   :  { %v54_v23 = vpop.permute.xlu0 %53 }
  0x88   :  { %v64_v24 = vpop.permute.xlu1 %63 }
  0x8b   :  { %v69_v28 = vpop.permute.xlu0 %68 }
  0x8c   :  { %v74_v33 = vpop.permute.xlu1 %73 }
  0x8f   :  { %v79_v40 = vpop.permute.xlu0 %78 }
  0x90   :  { %v84_v45 = vpop.permute.xlu1 %83 }
  0x94   :  { %v222_v62 = vpop.permute.xlu0 %221 }
  0x95   :  { %v226_v63 = vpop.permute.xlu1 %225 }
  0x98   :  { %v234_v12 = vpop.permute.xlu0 %233 }
  0x99   :  { %v230_v11 = vpop.permute.xlu1 %229 }
  0xdd   :  { %v548_v25 = vpop.f32.mrb[0].mxu0 }
  0xde   :  { %v180_v26 = vadd.f32 %v548_v25, %v59_v22  ;;  %v171_v27 = vpop.f32.mrb[1].mxu0  ;;  %v242_v25 = vpop.permute.xlu0 %241 }
  0xdf   :  { %v172_v29 = vadd.f32 %v171_v27, %v49_v21  ;;  %v549_v30 = vpop.f32.mrb[2].mxu0  ;;  %v238_v21 = vpop.permute.xlu1 %237 }
  0xe0   :  { %v183_v31 = vadd.f32 %v549_v30, %v64_v24  ;;  %v174_v32 = vpop.f32.mrb[3].mxu0  ;;  %v204_v35 = vmax.f32 %v180_v26, 0.0 }
  0xe1   :  { %v175_v34 = vadd.f32 %v174_v32, %v54_v23  ;;  %v202_v37 = vmax.f32 %v172_v29, 0.0  ;;  %v617_v32 = vld [vmem:[%s807_s3 + $0x8] sm:$0xff]  }
  0xe2   :  { %v205_v36 = vmax.f32 %v183_v31, 0.0 }
  0xe3   :  { %v203_v38 = vmax.f32 %v175_v34, 0.0  ;;  %v652_v34 = vmov 3  }
  0xe4   :  { %v217_v39 = vpack.c.bf16 %v205_v36, %v204_v35  ;;  %606 = vset.pattern.permute.xlu0 %v652_v34  ;;  %v341_v35 = vpop.permute.xlu1 %340 }
  0xe5   :  { %v552_v41 = vpop.f32.mrb[4].mxu0  ;;  %v216_v42 = vpack.c.bf16 %v203_v38, %v202_v37 }
  0xe6   :  { %v196_v43 = vadd.f32 %v552_v41, %v79_v40  ;;  %v187_v44 = vpop.f32.mrb[5].mxu0  ;;  %v345_v40 = vpop.permute.xlu0 %344 }
  0xe7   :  { %v188_v46 = vadd.f32 %v187_v44, %v69_v28  ;;  %v553_v47 = vpop.f32.mrb[6].mxu0  ;;  %555 = vmatpush3.bf16.msra.mxu1 %v216_v42 }
  0xe8   :  { %v199_v48 = vadd.f32 %v553_v47, %v84_v45  ;;  %v190_v49 = vpop.f32.mrb[7].mxu0  ;;  %556 = vmatprep.subr.bf16.mxu1 %v648_v19  ;;  %v208_v51 = vmax.f32 %v196_v43, 0.0  ;;  %v349_v36 = vpop.permute.xlu1 %348 }
  0xe9   :  { %v191_v50 = vadd.f32 %v190_v49, %v74_v33  ;;  %v206_v53 = vmax.f32 %v188_v46, 0.0  ;;  %v37_v33 = vld [vmem:[%s809_s5] sm:$0x1] }
  0xea   :  { %v209_v52 = vmax.f32 %v199_v48, 0.0  ;;  %430 = vperm.xlu0 %606, %v37_v33  }
  0xeb   :  { %v207_v54 = vmax.f32 %v191_v50, 0.0  ;;  %557 = vmatpush3.bf16.msra.mxu1 %v217_v39 }
  0xec   :  { %v219_v55 = vpack.c.bf16 %v209_v52, %v208_v51  ;;  %558 = vmatprep.subr.bf16.mxu1 %v648_v19  ;;  %v353_v41 = vpop.permute.xlu1 %352 }
  0xed   :  { %v218_v56 = vpack.c.bf16 %v207_v54, %v206_v53  ;;  %v425_v53 = vld [vmem:[%s808_s4] sm:$0x1]  ;;  %s622_s4 = scalar_lea.vmem %s492_s10, 16 }
  0xee   :  { %p623_p0 = scmp.ne.s32.totalorder %s492_s10, %s622_s4  ;;  %p628_p2 = scmp.lt.s32.totalorder %s626_s11, %s622_s4 }
  0xef   :  { %559 = vmatpush3.bf16.msra.mxu1 %v218_v56 }
  0xf0   :  { %560 = vmatprep.subr.bf16.mxu1 %v648_v19  ;;  %p629_p3 = por %p628_p2, %p627_p1 }
  0xf2   :  { %p630_p4 = pnand %p629_p3, %p623_p0 }
  0xf3   :  { %561 = vmatpush3.bf16.msra.mxu1 %v219_v55 }
  0xf6   :  { %563 = vmatmul.mubr.msk.bf16.vlgmr.msra.gmra.mrb[0].mxu1 %vm259_vm4, %v613_v57 }
  0xf7   :  { %566 = vmatprep.mubr.msk.bf16.mxu1 %vm649_vm3, %v648_v19 }
  0xfe   :  { %567 = vmatmul.mubr.msk.bf16.gmra.mrb[4].mxu1 %vm259_vm4, %v614_v58 }
  0xff   :  { %570 = vmatprep.mubr.msk.bf16.mxu1 %vm649_vm3, %v648_v19 }
 0x106   :  { %571 = vmatmul.mubr.msk.bf16.gmra.mrb[8].mxu1 %vm259_vm4, %v615_v59 }
 0x169   :  { %v431_v54 = vpop.permute.xlu0 %430 }
 0x1c9   :  { %v303_v0 = vpop.f32.mrb[0].mxu1 }
 0x1ca   :  { %v304_v1 = vadd.f32 %v303_v0, %v222_v62  ;;  %v564_v2 = vpop.f32.mrb[1].mxu1 }
 0x1cb   :  { %v306_v3 = vpop.f32.mrb[2].mxu1 }
 0x1cc   :  { %v307_v4 = vadd.f32 %v306_v3, %v226_v63  ;;  %v565_v5 = vpop.f32.mrb[3].mxu1  ;;  %v326_v6 = vmax.f32 %v304_v1, 0.0 }
 0x1ce   :  { %v327_v7 = vmax.f32 %v307_v4, 0.0 }
 0x1d0   :  { %v336_v10 = vpack.c.bf16 %v327_v7, %v326_v6 }
 0x1d1   :  { %v311_v14 = vpop.f32.mrb[4].mxu1 }
 0x1d2   :  { %v312_v8 = vadd.f32 %v311_v14, %v230_v11  ;;  %v568_v15 = vpop.f32.mrb[5].mxu1  ;;  %574 = vmatprep.subr.bf16.mxu0 %v336_v10 }
 0x1d3   :  { %v314_v9 = vpop.f32.mrb[6].mxu1  ;;  %575 = vmatpush3.bf16.msra.mxu0 %v336_v10 }
 0x1d4   :  { %v315_v13 = vadd.f32 %v314_v9, %v234_v12  ;;  %v569_v16 = vpop.f32.mrb[7].mxu1  ;;  %v328_v17 = vmax.f32 %v312_v8, 0.0 }
 0x1d6   :  { %v329_v18 = vmax.f32 %v315_v13, 0.0 }
 0x1d8   :  { %v337_v20 = vpack.c.bf16 %v329_v18, %v328_v17 }
 0x1d9   :  { %v319_v22 = vpop.f32.mrb[8].mxu1 }
 0x1da   :  { %v320_v23 = vadd.f32 %v319_v22, %v238_v21  ;;  %v572_v24 = vpop.f32.mrb[9].mxu1  ;;  %576 = vmatprep.subr.bf16.mxu0 %v337_v20 }
 0x1db   :  { %v322_v26 = vpop.f32.mrb[10].mxu1  ;;  %577 = vmatpush3.bf16.msra.mxu0 %v337_v20 }
 0x1dc   :  { %v323_v27 = vadd.f32 %v322_v26, %v242_v25  ;;  %v573_v28 = vpop.f32.mrb[11].mxu1  ;;  %v330_v29 = vmax.f32 %v320_v23, 0.0 }
 0x1de   :  { %v331_v30 = vmax.f32 %v323_v27, 0.0 }
 0x1e0   :  { %v338_v31 = vpack.c.bf16 %v331_v30, %v330_v29 }
 0x1e2   :  { %578 = vmatprep.subr.bf16.mxu0 %v338_v31 }
 0x1e3   :  { %579 = vmatpush3.bf16.msra.mxu0 %v338_v31 }
 0x1e4   :  { %584 = vmatprep.subr.bf16.mxu0 %v648_v19 }
 0x1e6   :  { %581 = vmatmul.mubr.msk.bf16.vlgmr.msra.gmra.mrb[8].mxu0 %vm365_vm5, %v617_v32 }
 0x1e7   :  { %588 = vmatprep.mubr.msk.bf16.mxu0 %vm649_vm3, %v648_v19 }
 0x2b9   :  { %v582_v37 = vpop.f32.mrb[8].mxu0 }
 0x2ba   :  { %v415_v38 = vadd.f32 %v582_v37, %v349_v36  ;;  %v406_v39 = vpop.f32.mrb[9].mxu0 }
 0x2bb   :  { %v407_v42 = vadd.f32 %v406_v39, %v341_v35  ;;  %v583_v43 = vpop.f32.mrb[10].mxu0 }
 0x2bc   :  { %v418_v44 = vadd.f32 %v583_v43, %v353_v41  ;;  %v409_v45 = vpop.f32.mrb[11].mxu0  ;;  %v423_v47 = vmax.f32 %v415_v38, 0.0 }
 0x2bd   :  { %v410_v46 = vadd.f32 %v409_v45, %v345_v40  ;;  %v421_v49 = vmax.f32 %v407_v42, 0.0 }
 0x2be   :  { %v424_v48 = vmax.f32 %v418_v44, 0.0 }
 0x2bf   :  { %v422_v50 = vmax.f32 %v410_v46, 0.0 }
 0x2c0   :  { %v427_v51 = vpack.c.bf16 %v424_v48, %v423_v47 }
 0x2c1   :  { %v426_v52 = vpack.c.bf16 %v422_v50, %v421_v49 }
 0x2c3   :  { %585 = vmatpush3.bf16.msra.mxu0 %v426_v52 }
 0x2c4   :  { %586 = vmatprep.subr.bf16.mxu0 %v648_v19 }
 0x2c7   :  { %587 = vmatpush3.bf16.msra.mxu0 %v427_v51 }
 0x2ca   :  { %589 = vmatmul.mubr.msk.bf16.vlgmr.msra.gmra.mrb[12].mxu0 %vm433_vm6, %v425_v53 }
 0x39d   :  { %v471_v55 = vpop.f32.mrb[12].mxu0 }
 0x39e   :  { %v590_v56 = vpop.f32.mrb[13].mxu0  ;;  %v472_v57 = vadd.f32 %v471_v55, %v431_v54 }
 0x39f   :  { %v474_v58 = vpop.f32.mrb[14].mxu0 }
 0x3a0   :  { %v520_v59 = vmul.f32 -1.442695, %v472_v57  ;;  %v591_v60 = vpop.f32.mrb[15].mxu0 }
 0x3a2   :  { %618 = vpow2.f32 %v520_v59 }
 0x3ac   :  { %v619_v61 = vpop.eup %618 }
 0x3ad   :  { %v480_v62 = vadd.f32 1.0, %v619_v61 }
 0x3af   :  { %620 = vrcp.f32 %v480_v62 }
 0x3b9   :  { %v621_v19 = vpop.eup %620 }
 0x3ba   :  { %484 = vst.msk [vmem:[#allocation2] sm:$0x1] %vm483_vm7, %v621_v19 }
 0x3bb   :  { %633 = shalt.err (!%p630_p4)
}
 0x3bc   :  { %s634_s14 = scalar_lea.hbm %s810_s6, 16 }
 0x3bd   :  { %p635_p5 = scmp.ne.s32.totalorder %s810_s6, %s634_s14  ;;  %p638_p6 = scmp.lt.u32.totalorder %s634_s14, %s810_s6 }
 0x3bf   :  { %p640_p7 = pnand %p638_p6, %p635_p5 }
 0x3c1   :  { %643 = shalt.err (!%p640_p7)
}
 0x3c2   :  { %494 = dma.vmem_to_hbm [thread:$0]  %s492_s10, 16, %s810_s6, [#allocation3]  }
 0x3c3   :  { %644 = dma.done.wait [#allocation3], 16  }
 0x3c4   :  { %645 = vsyncadd [#allocation3], 4294967280 }
 0x3c5   :  { %498 = vsyncpa [#allocation3], 1 }

</bundles_post_ra>
